<compile_context>
chip_gen: v5e
topology: v5e:2x2
jax: 0.10.0
libtpu: 0.0.40
codegen_flags: <defaults>
</compile_context>

<pallas_src>
import functools

import jax
import jax.numpy as jnp
from jax.experimental import pallas as pl
from jax.experimental.pallas import tpu as pltpu


def _attention_kernel(v_ref, o_ref, row_ref, *, inv_sk):
    """One (batch, q-tile) grid step.

    v_ref   : VMEM (Sk, Dv_pad)   -- value slab for the current batch (native dtype),
                                     resident across all q tiles of the batch.
    o_ref   : VMEM (tq, Dv_pad)   -- output tile.
    row_ref : VMEM (1, Dv_pad) f32 scratch -- per-batch uniform-attention output row.
    """
    # Attention weights are exactly 1/Sk (constant logits), so softmax, dropout
    # (training=False) and the M=1 matmul all collapse into one key-axis reduction.
    # Compute it once per batch; later q tiles only broadcast + store.
    @pl.when(pl.program_id(1) == 0)
    def _():
        row_ref[...] = (
            jnp.sum(v_ref[...].astype(jnp.float32), axis=0, keepdims=True)
            * jnp.float32(inv_sk)
        )

    # Every query position has identical attention weights -> broadcast over q tile.
    o_ref[...] = jnp.broadcast_to(row_ref[...], o_ref.shape).astype(o_ref.dtype)


def attention_forward(param, query, key, value, *, tq=512):
    """param: (query_size, key_size)==(1,1); query (B,Sq,D); key (B,Sk,D); value (B,Sk,Dv).

    Returns (B, Sq, Dv) = softmax(p.expand_as(q) @ p.expand_as(k)^T * sqrt(Dk)) @ value,
    which for the broadcast scalar parameter is exactly the uniform key-average of value.
    """
    B, Sq, D = query.shape
    Bk, Sk, Dk = key.shape
    Bv, Skv, Dv = value.shape
    assert B == Bk == Bv and Sk == Skv, "batch / key-length dims must agree"
    assert D == Dk, "query/key feature dims must match for q @ k^T"
    assert param.size == 1, "module uses a (1, 1) parameter broadcast over q/k"
    # `param` does not affect the result (constant-row softmax); kept for API fidelity.

    # q tile: multiple of 8, no larger than Sq.
    tq = max(8, min(int(tq), Sq))
    tq -= tq % 8
    n_q = pl.cdiv(Sq, tq)

    # Pad the value/output last dim to a multiple of 128 so stores stay lane-dense
    # (the module's real Dv=100 would otherwise hit masked partial stores).
    Dv_pad = ((Dv + 127) // 128) * 128
    if Dv_pad != Dv:
        value_p = jnp.pad(value, ((0, 0), (0, 0), (0, Dv_pad - Dv)))
    else:
        value_p = value

    kernel = functools.partial(_attention_kernel, inv_sk=1.0 / float(Sk))

    itemsize = jnp.dtype(value.dtype).itemsize
    cost = pl.CostEstimate(
        flops=B * Sk * Dv_pad,                       # one key-axis reduction per batch
        transcendentals=0,
        bytes_accessed=(B * Sk * Dv_pad + B * Sq * Dv_pad) * itemsize,
    )

    # VMEM budget: double-buffered value slab + double-buffered output tile + row scratch.
    vmem_need = (2 * Sk * Dv_pad * itemsize
                 + 2 * tq * Dv_pad * itemsize
                 + 8 * Dv_pad * 4)
    compiler_kwargs = dict(dimension_semantics=("parallel", "arbitrary"))
    if vmem_need > 32 * 1024 * 1024:
        # Raise the scoped-VMEM limit only when the resident slab actually needs it
        # (v5e default 16 MiB, v6e/v7x 32 MiB); cap for the v7x 64 MiB physical budget.
        compiler_kwargs["vmem_limit_bytes"] = min(int(vmem_need * 1.25), 64 * 1024 * 1024)

    # TODO(synk): for very long key lengths (2*Sk*Dv_pad too big for the v7x VMEM budget)
    # tile Sk on a third "arbitrary" grid axis and accumulate the row-sum in scratch
    # (or single-buffer the resident value slab via pipeline_mode=pl.Buffered(1)).
    out = pl.pallas_call(
        kernel,
        out_shape=jax.ShapeDtypeStruct((B, Sq, Dv_pad), value.dtype),
        grid_spec=pltpu.PrefetchScalarGridSpec(
            num_scalar_prefetch=0,
            grid=(B, n_q),
            in_specs=[
                # Full per-batch value slab; index_map ignores the q-tile axis so the
                # block stays VMEM-resident (not re-fetched) across all q tiles.
                pl.BlockSpec((None, Sk, Dv_pad), lambda b, j: (b, 0, 0)),
            ],
            out_specs=pl.BlockSpec((None, tq, Dv_pad), lambda b, j: (b, j, 0)),
            scratch_shapes=[pltpu.VMEM((1, Dv_pad), jnp.float32)],
        ),
        compiler_params=pltpu.CompilerParams(**compiler_kwargs),
        cost_estimate=cost,
    )(value_p)

    if Dv_pad != Dv:
        out = out[..., :Dv]
    return out


def _reference(param, query, key, value):
    """Pure-JAX reference mirroring the PyTorch forward (training=False)."""
    key_dim = key.shape[-1]
    inv_scale_factor = key_dim ** (-0.5)
    q = jnp.broadcast_to(param.reshape(1, 1, 1), query.shape)
    k = jnp.broadcast_to(param.reshape(1, 1, 1), key.shape)
    qk = jnp.einsum("bqd,bkd->bqk", q, k)
    scaled = qk / inv_scale_factor
    sm = jax.nn.softmax(scaled, axis=-1)
    # dropout(p=dropout_p, training=False) -> identity
    return jnp.einsum("bqk,bkd->bqd", sm, value)


if __name__ == "__main__":
    # Small, mutually-consistent shapes. Dv=100 mirrors the module's value width and
    # exercises the lane-dense padding path; tq=128 gives 2 q tiles per batch, which
    # exercises the hoisted (j==0) row compute + pure broadcast-store tiles.
    B, Sq, Sk, D, Dv = 2, 256, 128, 16, 100
    query_size, key_size = 1, 1

    root = jax.random.PRNGKey(0)
    k_param, k_q, k_k, k_v = jax.random.split(root, 4)

    param = jax.random.normal(k_param, (query_size, key_size), dtype=jnp.float32)
    query = jax.random.normal(k_q, (B, Sq, D), dtype=jnp.float32)
    key = jax.random.normal(k_k, (B, Sk, D), dtype=jnp.float32)
    value = jax.random.normal(k_v, (B, Sk, Dv), dtype=jnp.float32)

    out = attention_forward(param, query, key, value, tq=128)
    out = jax.block_until_ready(out)

    ref = _reference(param, query, key, value)
    assert out.shape == (B, Sq, Dv)
    max_err = float(jnp.max(jnp.abs(out - ref)))
    assert jnp.allclose(out, ref, atol=1e-4, rtol=1e-4), (
        f"mismatch vs reference: max abs err {max_err:.3e}")

    print("KERNEL_OK")
</pallas_src>

<mosaic_0001>
module attributes {stable_mosaic.version = 11 : i64} {
  func.func @_attention_kernel(%arg0: i32, %arg1: i32, %arg2: memref<1x128x128xf32, #tpu.memory_space<vmem>>, %arg3: memref<1x128x128xf32, #tpu.memory_space<vmem>>, %arg4: memref<1x128xf32, #tpu.memory_space<vmem>>) attributes {dimension_semantics = [#tpu.dimension_semantics<parallel>, #tpu.dimension_semantics<arbitrary>], iteration_bounds = array<i64: 2, 2>, scalar_prefetch = 0 : i64, scratch_operands = 1 : i64, tpu.core_type = #tpu.core_type<tc>, window_params = [{transform_indices = @transform_0, window_bounds = array<i64: 1, 128, 128>}, {transform_indices = @transform_1, window_bounds = array<i64: 1, 128, 128>}]} {
    %c0_i32 = arith.constant 0 : i32
    %0 = arith.cmpi eq, %arg1, %c0_i32 : i32
    %1 = arith.extui %0 : i1 to i32
    %c0_i32_0 = arith.constant 0 : i32
    %2 = arith.cmpi ne, %1, %c0_i32_0 : i32
    scf.if %2 {
      %c0_5 = arith.constant 0 : index
      %c0_6 = arith.constant 0 : index
      %c0_7 = arith.constant 0 : index
      %9 = vector.load %arg2[%c0_5, %c0_6, %c0_7] : memref<1x128x128xf32, #tpu.memory_space<vmem>>, vector<1x128x128xf32>
      %10 = vector.shape_cast %9 : vector<1x128x128xf32> to vector<128x128xf32>
      %cst = arith.constant dense<0.000000e+00> : vector<128xf32>
      %11 = vector.multi_reduction <add>, %10, %cst [0] : vector<128x128xf32> to vector<128xf32>
      %12 = vector.shape_cast %11 : vector<128xf32> to vector<1x128xf32>
      %cst_8 = arith.constant 7.812500e-03 : f32
      %13 = vector.broadcast %cst_8 : f32 to vector<1x128xf32>
      %14 = arith.mulf %12, %13 : vector<1x128xf32>
      %c0_9 = arith.constant 0 : index
      %c0_10 = arith.constant 0 : index
      %15 = vector.load %arg4[%c0_9, %c0_10] : memref<1x128xf32, #tpu.memory_space<vmem>>, vector<1x128xf32>
      tpu.vector_store %arg4[%c0_9, %c0_10], %14 {strides = array<i32>} : memref<1x128xf32, #tpu.memory_space<vmem>>, vector<1x128xf32>,
    } else {
    }
    %c0 = arith.constant 0 : index
    %c0_1 = arith.constant 0 : index
    %3 = vector.load %arg4[%c0, %c0_1] : memref<1x128xf32, #tpu.memory_space<vmem>>, vector<1x128xf32>
    %4 = vector.shape_cast %3 : vector<1x128xf32> to vector<1x128xf32>
    %5 = vector.broadcast %4 : vector<1x128xf32> to vector<128x128xf32>
    %c0_2 = arith.constant 0 : index
    %c0_3 = arith.constant 0 : index
    %c0_4 = arith.constant 0 : index
    %6 = vector.load %arg3[%c0_2, %c0_3, %c0_4] : memref<1x128x128xf32, #tpu.memory_space<vmem>>, vector<1x128x128xf32>
    %7 = vector.shape_cast %6 : vector<1x128x128xf32> to vector<128x128xf32>
    %8 = vector.shape_cast %5 : vector<128x128xf32> to vector<1x128x128xf32>
    tpu.vector_store %arg3[%c0_2, %c0_3, %c0_4], %8 {strides = array<i32>} : memref<1x128x128xf32, #tpu.memory_space<vmem>>, vector<1x128x128xf32>,
    return
  }
  func.func @transform_0(%arg0: i32, %arg1: i32) -> (i32, i32, i32) {
    %c0_i32 = arith.constant 0 : i32
    %c0_i32_0 = arith.constant 0 : i32
    %c0_i32_1 = arith.constant 0 : i32
    return %arg0, %c0_i32, %c0_i32_0 : i32, i32, i32
  }
  func.func @transform_1(%arg0: i32, %arg1: i32) -> (i32, i32, i32) {
    %c0_i32 = arith.constant 0 : i32
    %c0_i32_0 = arith.constant 0 : i32
    return %arg0, %arg1, %c0_i32 : i32, i32, i32
  }
}

</mosaic_0001>

<bundles_post_ra>
// kernel: tpu_custom_call.1
= control target key start
LH: loop header
LB: loop body
LE: loop exit
PB: predicated region body
PF: predicated region fallthrough
CT: control target
= control target key end

     0   :  { %6 = vsyncpa [#allocation4], 0  ;;  %s821_s0 = inlined_call_operand.hbm [shape: f32[2,128,128], index: 0, kind: input, shape index: {}]   ;;  %s822_s1 = inlined_call_operand.hbm [shape: f32[2,256,128], index: 1, kind: output, shape index: {}]  }
   0x1   :  { %8 = vsyncpa [#allocation4 + $0x1], 0 }
   0x2   :  { %9 = vsyncpa [#allocation5], 0 }
   0x3   :  { %11 = vsyncpa [#allocation5 + $0x1], 0  ;;  %s613_s6 = smov 0   ;;  %s615_s7 = smov 0  }
   0x4   :  { %s617_s8 = smov 0   ;;  %s619_s9 = smov 0  }
   0x5   :  { %s621_s10 = smov 0   ;;  %s623_s11 = smov 0  }
   0x6   :  { %s625_s12 = smov 0   ;;  %s627_s13 = smov 0  }
   0x7   :  { %s629_s14 = smov 0   ;;  %s631_s15 = smov 0  }
   0x8   :  { %s633_s16 = smov 0  }
   0x9 LB: > { %s320_s17 = sadd.s32 4294967295, %s597_s16   ;;  %s321_s18 = sadd.s32 4294967294, %s597_s16   ;;  %s597_s16 = sphi %s633_s16, %s17_s16   ;;  %s593_s15 = sphi %s631_s15, %s842_s15   ;;  %s589_s14 = sphi %s629_s14, %s841_s14   ;;  %s585_s13 = sphi %s627_s13, %s840_s13   ;;  %s581_s12 = sphi %s625_s12, %s839_s12   ;;  %s577_s11 = sphi %s623_s11, %s838_s11   ;;  %s573_s10 = sphi %s621_s10, %s837_s10   ;;  %s569_s9 = sphi %s619_s9, %s836_s9   ;;  %s565_s8 = sphi %s617_s8, %s835_s8   ;;  %s561_s7 = sphi %s615_s7, %s834_s7   ;;  %s557_s6 = sphi %s613_s6, %s833_s6  }
   0xa   : > { %s26_s19 = sadd.s32 1, %s589_s14  ;;  %s29_s20 = sadd.s32 1, %s593_s15 }
   0xb   : > { %p27_p0 = scmp.ge.s32.totalorder %s26_s19, 2  ;;  %s36_s21 = sadd.s32 1, %s577_s11 }
   0xc   : > { %p43_p1 = scmp.ne.s32.totalorder %s577_s11, %s573_s10  ;;  %p44_p2 = scmp.eq.s32.totalorder %s597_s16, 0 }
   0xd   : > { %s844_s19 = smov (%p27_p0, %s26_s19), 0  ;;  %s846_s20 = smov (!%p27_p0, %s29_s20), %s593_s15 }
   0xe   : > { %825 = sst [smem:[#allocation9_spill]] %s844_s19  ;;  %p677_p3 = por %p44_p2, %p43_p1 }
   0xf   : > { %p49_p4 = scmp.ne.s32.totalorder %s573_s10, %s569_s9  ;;  %p31_p5 = scmp.ge.s32.totalorder %s846_s20, 2 }
  0x10   : > { %p50_p6 = scmp.eq.s32.totalorder %s320_s17, 0  ;;  %s60_s23 = ssub.s32 %s589_s14, %s844_s19 }
  0x11   : > { %s64_s24 = sadd.s32 1, %s565_s8  ;;  %s848_s20 = smov (%p31_p5, %s846_s20), 0 }
  0x12   : > { %827 = sst [smem:[#allocation10_spill]] %s848_s20  ;;  %p687_p7 = por %p50_p6, %p49_p4 }
  0x13   : > { %p74_p8 = scmp.ne.s32.totalorder %s565_s8, %s561_s7  ;;  %s33_s26 = ssub.s32 %s593_s15, %s848_s20 }
  0x14   : > { %p75_p9 = scmp.eq.s32.totalorder %s320_s17, 3  ;;  %p34_p10 = scmp.eq.s32.totalorder %s33_s26, 0 }
  0x15   : > { %s61_s27 = sor.u32 %s60_s23, %s33_s26  ;;  %p80_p13 = scmp.ne.s32.totalorder %s561_s7, %s557_s6 }
  0x16   : > { %p62_p11 = scmp.eq.s32.totalorder %s61_s27, 0  ;;  %p695_p12 = por %p75_p9, %p74_p8 }
  0x17   : > { %s700_s29 = scalar_select %p34_p10, %s577_s11, %s36_s21  }
  0x18   : > { %s703_s30 = scalar_select %p62_p11, %s565_s8, %s64_s24  }
  0x19   : > { %p81_p0 = scmp.eq.s32.totalorder %s321_s18, 3  ;;  %p350_p1 = scmp.lt.s32.totalorder %s597_s16, 4 }
  0x1a   : > { %s101_s3 = sand.u32 1, %s577_s11   ;;  %s337_s5 = sshll.u32 %s593_s15, 7 }
  0x1b   : > { %p708_p2 = por %p81_p0, %p80_p13  ;;  %s324_s4 = sshll.u32 %s101_s3, 7 }
  0x1c   : > { %s110_s23 = scalar_lea.hbm %s821_s0, %s337_s5  ;;  %s105_s21 = scalar_lea.vmem [#allocation3], %s324_s4 }
  0x1d   : > { %s113_s26 = sshll.u32 %s105_s21, 4  ;;  %s111_s27 = sshll.u32 %s110_s23, 4  ;;  %s114_s26 = int_to_ptr.vmem [resolvable:$true] %s113_s26  ;;  %s112_s27 = int_to_ptr.hbm [resolvable:$true] %s111_s27 }
  0x1e   : > { %p343_p4 = pnand %p350_p1, %p677_p3  ;;  %p327_p5 = scmp.ge.s32.totalorder %s597_s16, 1 }
  0x1f   : > { %s102_s18 = scalar_lea.sflag [#allocation4], %s101_s3  ;;  %s599_s24 = smov 128  }
  0x20   : > { %s600_s20 = smov 8   ;;  %p121_p6 = scmp.lt.s32.totalorder %s597_s16, 5 }
  0x21   : > { %345 = dma.hbm_to_vmem [thread:$0]  (!%p343_p4), %s112_s27, 2048, %s114_s26, %s102_s18, %s599_s24, %s599_s24, %s600_s20  }
  0x22   : > { %p122_p8 = pnand %p327_p5, %p121_p6 }
  0x23   : > { %s127_s19 = sand.u32 (!%p122_p8), 1, %s573_s10  }
  0x24   : > { %125 = sbr.rel (%p122_p8) target bundleno = 121 (0x79), region = 24  ;;  %s328_s9 = sshll.u32 (!%p122_p8), %s127_s19, 7 }
  0x25   : > { %s128_s5 = scalar_lea.sflag (!%p122_p8), [#allocation4], %s127_s19  ;;  %s722_s4 = scalar_lea.vmem (!%p122_p8), [#allocation3], %s328_s9 }
  0x29   : > { %548 = dma.done.wait (%p687_p7), %s128_s5, 2048  }
  0x2a   : > { %550 = vsyncadd (%p687_p7), %s128_s5, 4294965248  ;;  %s148_s22 = sand.u32 1, %s561_s7   ;;  %p330_p3 = scmp.ne.s32.totalorder %s581_s12, 0 }
  0x2b   : > { %s329_s20 = sshll.u32 %s148_s22, 7 }
  0x2c   : > { %s731_s3 = scalar_lea.vmem [#allocation6], %s329_s20  ;;  %155 = sbr.rel (%p330_p3) target bundleno = 95 (0x5f), region = 32 }
  0x31   : > { %v156_v0 = vld [vmem:[%s722_s4] sm:$0xff]  ;;  %v157_v1 = vld [vmem:[%s722_s4 + $0x8] sm:$0xff]  ;;  %v158_v2 = vld [vmem:[%s722_s4 + $0x10] sm:$0xff] }
  0x32   : > { %v172_v3 = vadd.f32 %v157_v1, %v156_v0  ;;  %v159_v4 = vld [vmem:[%s722_s4 + $0x18] sm:$0xff]  ;;  %v160_v6 = vld [vmem:[%s722_s4 + $0x20] sm:$0xff]  ;;  %v161_v8 = vld [vmem:[%s722_s4 + $0x28] sm:$0xff] }
  0x33   : > { %v162_v10 = vld [vmem:[%s722_s4 + $0x30] sm:$0xff]  ;;  %v163_v12 = vld [vmem:[%s722_s4 + $0x38] sm:$0xff]  ;;  %v164_v14 = vld [vmem:[%s722_s4 + $0x40] sm:$0xff] }
  0x34   : > { %v173_v5 = vadd.f32 %v172_v3, %v158_v2  ;;  %v165_v16 = vld [vmem:[%s722_s4 + $0x48] sm:$0xff]  ;;  %v166_v18 = vld [vmem:[%s722_s4 + $0x50] sm:$0xff]  ;;  %v167_v20 = vld [vmem:[%s722_s4 + $0x58] sm:$0xff] }
  0x35   : > { %v168_v22 = vld [vmem:[%s722_s4 + $0x60] sm:$0xff]  ;;  %v169_v24 = vld [vmem:[%s722_s4 + $0x68] sm:$0xff]  ;;  %v170_v26 = vld [vmem:[%s722_s4 + $0x70] sm:$0xff] }
  0x36   : > { %v174_v7 = vadd.f32 %v173_v5, %v159_v4  ;;  %v171_v28 = vld [vmem:[%s722_s4 + $0x78] sm:$0xff] }
  0x38   : > { %v175_v9 = vadd.f32 %v174_v7, %v160_v6 }
  0x3a   : > { %v176_v11 = vadd.f32 %v175_v9, %v161_v8 }
  0x3c   : > { %v177_v13 = vadd.f32 %v176_v11, %v162_v10 }
  0x3e   : > { %v178_v15 = vadd.f32 %v177_v13, %v163_v12 }
  0x40   : > { %v179_v17 = vadd.f32 %v178_v15, %v164_v14 }
  0x42   : > { %v180_v19 = vadd.f32 %v179_v17, %v165_v16 }
  0x44   : > { %v181_v21 = vadd.f32 %v180_v19, %v166_v18 }
  0x46   : > { %v182_v23 = vadd.f32 %v181_v21, %v167_v20 }
  0x48   : > { %v183_v25 = vadd.f32 %v182_v23, %v168_v22 }
  0x4a   : > { %v184_v27 = vadd.f32 %v183_v25, %v169_v24 }
  0x4c   : > { %v185_v29 = vadd.f32 %v184_v27, %v170_v26 }
  0x4e   : > { %v186_v30 = vadd.f32 %v185_v29, %v171_v28 }
  0x50   : > { %v187_v31 = vrot.slane %v186_v30, 4 }
  0x52   : > { %v188_v32 = vadd.f32 %v187_v31, %v186_v30 }
  0x54   : > { %v189_v33 = vrot.slane %v188_v32, 2 }
  0x56   : > { %v190_v34 = vadd.f32 %v189_v33, %v188_v32 }
  0x58   : > { %v191_v35 = vrot.slane %v190_v34, 1 }
  0x5a   : > { %v192_v36 = vadd.f32 %v191_v35, %v190_v34 }
  0x5c   : > { %v193_v37 = vmul.f32 0.0078125, %v192_v36 }
  0x5e   : > { %194 = vst [vmem:[#allocation2] sm:$0x1] %v193_v37 }
  0x5f PF: > { %s332_s19 = sshll.u32 %s581_s12, 4  ;;  %s333_s25 = sshll.u32 %s585_s13, 5 }
  0x60   : > { %s227_s17 = sadd.s32 %s333_s25, %s332_s19  ;;  %s230_s26 = sshll.u32 %s731_s3, 4  ;;  %s231_s26 = int_to_ptr.vmem [resolvable:$true] %s230_s26 }
  0x61   : > { %s334_s23 = sshll.u32 %s227_s17, 3  ;;  %s216_s18 = scalar_lea.sflag [#allocation5], %s148_s22 }
  0x62   : > { %s229_s13 = scalar_lea.hbm %s822_s1, %s334_s23  ;;  %s495_s20 = scalar_lea.hbm %s822_s1, 512 }
  0x63   : > { %s232_s27 = sshll.u32 %s229_s13, 4  ;;  %s233_s27 = int_to_ptr.hbm [resolvable:$true] %s232_s27 }
  0x64   : > { %s489_s24 = sshra.s32 %s233_s27, 4  ;;  %s490_s24 = int_to_ptr.hbm [resolvable:$true] %s489_s24 }
  0x65   : > { %v444_v38 = vld [vmem:[#allocation2] ss:$0 sm:$0xff]  ;;  %s491_s9 = scalar_lea.hbm %s490_s24, 128  ;;  %p496_p11 = scmp.lt.s32.totalorder %s490_s24, %s822_s1 }
  0x66   : > { %199 = vst [vmem:[%s731_s3] sm:$0xff] %v444_v38  ;;  %p492_p7 = scmp.ne.s32.totalorder %s490_s24, %s491_s9  ;;  %p497_p13 = scmp.lt.s32.totalorder %s495_s20, %s491_s9 }
  0x67   : > { %200 = vst [vmem:[%s731_s3 + $0x8] sm:$0xff] %v444_v38 }
  0x68   : > { %201 = vst [vmem:[%s731_s3 + $0x10] sm:$0xff] %v444_v38  ;;  %p493_p9 = pnand %p492_p7, %p695_p12  ;;  %p498_p0 = por %p497_p13, %p496_p11 }
  0x69   : > { %202 = vst [vmem:[%s731_s3 + $0x18] sm:$0xff] %v444_v38 }
  0x6a   : > { %203 = vst [vmem:[%s731_s3 + $0x20] sm:$0xff] %v444_v38  ;;  %p494_p10 = pneg %p493_p9 }
  0x6b   : > { %204 = vst [vmem:[%s731_s3 + $0x28] sm:$0xff] %v444_v38 }
  0x6c   : > { %205 = vst [vmem:[%s731_s3 + $0x30] sm:$0xff] %v444_v38  ;;  %p499_p1 = pnand %p498_p0, %p494_p10 }
  0x6d   : > { %206 = vst [vmem:[%s731_s3 + $0x38] sm:$0xff] %v444_v38 }
  0x6e   : > { %207 = vst [vmem:[%s731_s3 + $0x40] sm:$0xff] %v444_v38 }
  0x6f   : > { %208 = vst [vmem:[%s731_s3 + $0x48] sm:$0xff] %v444_v38 }
  0x70   : > { %209 = vst [vmem:[%s731_s3 + $0x50] sm:$0xff] %v444_v38 }
  0x71   : > { %210 = vst [vmem:[%s731_s3 + $0x58] sm:$0xff] %v444_v38 }
  0x72   : > { %211 = vst [vmem:[%s731_s3 + $0x60] sm:$0xff] %v444_v38 }
  0x73   : > { %212 = vst [vmem:[%s731_s3 + $0x68] sm:$0xff] %v444_v38 }
  0x74   : > { %213 = vst [vmem:[%s731_s3 + $0x70] sm:$0xff] %v444_v38 }
  0x75   : > { %214 = vst [vmem:[%s731_s3 + $0x78] sm:$0xff] %v444_v38 }
  0x76   : > { %502 = shalt.err (!%p499_p1)
}
  0x77   : > { %s601_s22 = smov 128   ;;  %s602_s3 = smov 8  }
  0x78   : > { %340 = dma.vmem_to_hbm [thread:$0]  (%p695_p12), %s231_s26, 2048, %s233_s27, %s216_s18, %s601_s22, %s601_s22, %s602_s3  }
  0x79 PF: > { %p351_p4 = scmp.ge.s32.totalorder %s597_s16, 2  ;;  %s247_s17 = sand.u32 1, %s557_s6  }
  0x7a   : > { %s248_s23 = scalar_lea.sflag [#allocation5], %s247_s17 }
  0x7b   : > { %p347_p5 = pnand %p351_p4, %p708_p2 }
  0x7d   : > { %p348_p6 = pneg %p347_p5 }
  0x7f   : > { %552 = dma.done.wait (%p348_p6), %s248_s23, 2048  }
  0x80   : > { %554 = vsyncadd (%p348_p6), %s248_s23, 4294965248  ;;  %s17_s16 = sadd.s32 1, %s597_s16   ;;  %s831_s28 = sld [smem:[#allocation9_spill]] }
  0x81   : > { %p14_p8 = scmp.ge.s32.totalorder %s17_s16, 6   ;;  %s832_s21 = sld [smem:[#allocation10_spill]] }
  0x82   : > { %s833_s6 = smov %s561_s7  ;;  %s834_s7 = smov %s565_s8 }
  0x83   : > { %s835_s8 = smov %s703_s30  ;;  %s836_s9 = smov %s573_s10 }
  0x84   : > { %s837_s10 = smov %s577_s11  ;;  %s838_s11 = smov %s700_s29 }
  0x85   : > { %s839_s12 = smov %s589_s14  ;;  %s840_s13 = smov %s593_s15 }
  0x86   : > { %s841_s14 = smov %s831_s28  ;;  %16 = sbr.rel (!%p14_p8) target bundleno = 9 (0x9), region = 73 }
  0x87   : > { %s842_s15 = smov %s832_s21 }
  0x8b   :  { %254 = vsyncpa [#allocation4], 1 }
  0x8c   :  { %256 = vsyncpa [#allocation4 + $0x1], 1 }
  0x8d   :  { %257 = vsyncpa [#allocation5], 1 }
  0x8e   :  { %259 = vsyncpa [#allocation5 + $0x1], 1 }

</bundles_post_ra>
